<compile_context>
chip_gen: v7x
topology: tpu7x:2x2x1
jax: 0.10.0
libtpu: 0.0.40
codegen_flags: <defaults>
</compile_context>

<pallas_src>
import jax
import jax.numpy as jnp
from jax.experimental import pallas as pl
from jax.experimental.pallas import tpu as pltpu


def _gamma_kernel(gamma_ref, x_ref, o_ref):
    # gamma_ref: SMEM (1,) f32 scalar; x_ref/o_ref: VMEM (br, 128) row-tiles.
    g = gamma_ref[0]
    x = x_ref[...].astype(jnp.float32)
    o_ref[...] = jnp.power(x, g).astype(o_ref.dtype)


def gamma_adjust(x, gamma, *, block_rows=1024):
    """Apply y = x ** gamma elementwise via a tiled, pipelined Pallas TPU kernel.

    x: float array (any shape, e.g. NCHW); gamma: shape-(1,) float parameter.
    """
    orig_shape = x.shape
    orig_dtype = x.dtype
    total = x.size
    lane = 128

    itemsize = jnp.dtype(orig_dtype).itemsize
    pack = max(1, 4 // itemsize)          # 1 for f32, 2 for bf16, 4 for int8
    sub = 8 * pack                        # packed sublane count
    granule = lane * sub                  # pad granule keeps rows % sub == 0
    assert block_rows % sub == 0, "block_rows must be sublane-aligned"

    # Flatten; pad only a ragged tail (no pad when total % granule == 0).
    x_flat = jnp.reshape(x, (-1,))
    rem = total % granule
    if rem != 0:
        x_flat = jnp.pad(x_flat, (0, granule - rem))
    padded_total = x_flat.size
    rows = padded_total // lane
    x2d = jnp.reshape(x_flat, (rows, lane))

    # Row-tile: large lane-dense tiles amortize per-step overhead (~0.35us) and
    # stay well within VMEM with in+out double-buffering (f32: 4 x 512 KiB).
    # rows and block_rows are both multiples of `sub`, so br is sub-aligned.
    br = min(block_rows, rows)

    # gamma stays f32 regardless of x dtype; compute happens in f32 in-kernel.
    gamma_s = jnp.asarray(gamma, dtype=jnp.float32).reshape((1,))

    cost = pl.CostEstimate(
        flops=0,
        transcendentals=2 * padded_total,           # pow = exp(g * log x)
        bytes_accessed=2 * padded_total * itemsize,
    )

    out2d = pl.pallas_call(
        _gamma_kernel,
        out_shape=jax.ShapeDtypeStruct((rows, lane), orig_dtype),
        grid_spec=pltpu.PrefetchScalarGridSpec(
            num_scalar_prefetch=0,
            grid=(pl.cdiv(rows, br),),
            in_specs=[
                pl.BlockSpec(memory_space=pltpu.SMEM),        # gamma (f32 scalar)
                pl.BlockSpec((br, lane), lambda i: (i, 0)),   # x row-tile
            ],
            out_specs=pl.BlockSpec((br, lane), lambda i: (i, 0)),
        ),
        compiler_params=pltpu.CompilerParams(
            dimension_semantics=("parallel",),                # shard tiles on v7x's 2 TCs
        ),
        cost_estimate=cost,
    )(gamma_s, x2d)

    out_flat = jnp.reshape(out2d, (-1,))
    if padded_total != total:
        out_flat = out_flat[:total]
    return jnp.reshape(out_flat, orig_shape)


if __name__ == "__main__":
    key = jax.random.PRNGKey(0)
    # Images are normalized to [0, 1]; keep positive so pow is well-defined.
    x = jax.random.uniform(key, (2, 4, 16, 16), dtype=jnp.float32,
                           minval=0.0, maxval=1.0)

    # Deterministic parameter init matching nn.Parameter(torch.ones((1,))).
    gamma = jnp.ones((1,), dtype=jnp.float32)

    y = gamma_adjust(x, gamma)
    jax.block_until_ready(y)

    # Sanity check against plain JAX reference (also exercise gamma != 1).
    y_ref = jnp.power(x, gamma[0])
    assert y.shape == x.shape and y.dtype == x.dtype
    assert jnp.max(jnp.abs(y - y_ref)) < 1e-5

    gamma2 = jnp.asarray([1.7], dtype=jnp.float32)
    y2 = gamma_adjust(x, gamma2)
    jax.block_until_ready(y2)
    assert jnp.max(jnp.abs(y2 - jnp.power(x, gamma2[0]))) < 1e-5

    print("KERNEL_OK")
</pallas_src>

<mosaic_0001>
module attributes {stable_mosaic.version = 11 : i64} {
  func.func @_gamma_kernel(%arg0: i32, %arg1: memref<1xf32, #tpu.memory_space<smem>>, %arg2: memref<16x128xf32, #tpu.memory_space<vmem>>, %arg3: memref<16x128xf32, #tpu.memory_space<vmem>>) attributes {dimension_semantics = [#tpu.dimension_semantics<parallel>], iteration_bounds = array<i64: 1>, scalar_prefetch = 0 : i64, scratch_operands = 0 : i64, tpu.core_type = #tpu.core_type<tc>, window_params = [{transform_indices = @transform_0, window_bounds = array<i64: 1>}, {transform_indices = @transform_1, window_bounds = array<i64: 16, 128>}, {transform_indices = @transform_2, window_bounds = array<i64: 16, 128>}]} {
    %c0 = arith.constant 0 : index
    %0 = memref.load %arg1[%c0] : memref<1xf32, #tpu.memory_space<smem>>
    %c0_0 = arith.constant 0 : index
    %c0_1 = arith.constant 0 : index
    %1 = vector.load %arg2[%c0_0, %c0_1] : memref<16x128xf32, #tpu.memory_space<vmem>>, vector<16x128xf32>
    %2 = vector.broadcast %0 : f32 to vector<16x128xf32>
    %3 = math.powf %1, %2 : vector<16x128xf32>
    %c0_2 = arith.constant 0 : index
    %c0_3 = arith.constant 0 : index
    %4 = vector.load %arg3[%c0_2, %c0_3] : memref<16x128xf32, #tpu.memory_space<vmem>>, vector<16x128xf32>
    tpu.vector_store %arg3[%c0_2, %c0_3], %3 {strides = array<i32>} : memref<16x128xf32, #tpu.memory_space<vmem>>, vector<16x128xf32>,
    return
  }
  func.func @transform_0(%arg0: i32) -> i32 {
    %c0_i32 = arith.constant 0 : i32
    %c0_i32_0 = arith.constant 0 : i32
    return %c0_i32 : i32
  }
  func.func @transform_1(%arg0: i32) -> (i32, i32) {
    %c0_i32 = arith.constant 0 : i32
    %c0_i32_0 = arith.constant 0 : i32
    return %arg0, %c0_i32 : i32, i32
  }
  func.func @transform_2(%arg0: i32) -> (i32, i32) {
    %c0_i32 = arith.constant 0 : i32
    %c0_i32_0 = arith.constant 0 : i32
    return %arg0, %c0_i32 : i32, i32
  }
}

</mosaic_0001>

<bundles_post_ra>
// kernel: tpu_custom_call.1
= control target key start
LH: loop header
LB: loop body
LE: loop exit
PB: predicated region body
PF: predicated region fallthrough
CT: control target
= control target key end

     0   :  { %8 = vsyncpa [#allocation4], 0  ;;  %s435_s0 = inlined_call_operand.<no memory space> [shape: f32[1], index: 0, kind: input, shape index: {}]   ;;  %s436_s1 = inlined_call_operand.hbm [shape: f32[16,128], index: 1, kind: input, shape index: {}]   ;;  %s437_s2 = inlined_call_operand.hbm [shape: f32[16,128], index: 2, kind: output, shape index: {}]  }
   0x1   :  { %9 = vsyncpa [#allocation5], 0  ;;  %s218_s9 = smov [#allocation3]   ;;  %s170_s13 = scalar_lea.hbm %s436_s1, 256 }
   0x2   :  { %s17_s10 = sshll.u32 %s218_s9, 4  ;;  %p171_p0 = scmp.ne.s32.totalorder %s436_s1, %s170_s13  ;;  %s18_s10 = int_to_ptr.vmem [resolvable:$true] %s17_s10 }
   0x3   :  { %p174_p1 = scmp.lt.u32.totalorder %s170_s13, %s436_s1 }
   0x5   :  { %p176_p2 = pnand %p174_p1, %p171_p0 }
   0x7   :  { %179 = shalt.err (!%p176_p2)
}
   0x8   :  { %s180_s18 = scalar_lea.vmem %s18_s10, 256  ;;  %p185_p4 = scmp.lt.s32.totalorder %s18_s10, %s18_s10 }
   0x9   :  { %p181_p3 = scmp.ne.s32.totalorder %s18_s10, %s180_s18  ;;  %p186_p5 = scmp.lt.s32.totalorder %s180_s18, %s180_s18 }
   0xb   :  { %p187_p6 = por %p186_p5, %p185_p4 }
   0xd   :  { %p188_p7 = pnand %p187_p6, %p181_p3 }
   0xf   :  { %191 = shalt.err (!%p188_p7)
}
  0x10   :  { %s219_s19 = smov 128   ;;  %s220_s20 = smov 8  }
  0x11   :  { %23 = dma.hbm_to_vmem [thread:$0]  %s436_s1, 256, %s18_s10, [#allocation4], %s219_s19, %s219_s19, %s220_s20  }
  0x12   :  { %214 = dma.done.wait [#allocation4], 256  }
  0x13   :  { %215 = vsyncadd [#allocation4], 4294967040  ;;  %v257_v0 = vstv %s435_s0  ;;  %v262_v2 = vld [vmem:[#allocation3] sm:$0xff]  ;;  %v264_v3 = vld [vmem:[#allocation3 + $0x8] sm:$0xff]  ;;  %v221_v18 = vmov 2139095040   ;;  %v222_v24 = vmov 0  }
  0x14   :  { %v260_v1 = vand.u32 2147483647, %v257_v0  ;;  %v267_v4 = vand.u32 2147483647, %v262_v2  ;;  %v272_v6 = vand.u32 2147483647, %v264_v3  ;;  %v61_v7 = vtrunc.f32 %v257_v0 }
  0x15   :  { %vm72_vm3 = vcmp.lt.f32.partialorder %v262_v2, 0  ;;  %vm60_vm6 = vcmp.lt.f32.partialorder %v257_v0, 0  ;;  %vm73_vm7 = vcmp.eq.f32.partialorder %v262_v2, 0  ;;  %vm439_vm11 = vcmp.eq.f32.partialorder %v264_v3, 0  ;;  %s223_s0 = smov [#allocation6]  }
  0x16   :  { %162 = vlog2.f32 %v267_v4  ;;  %v65_v5 = vtrunc.f32 %v260_v1  ;;  %vm438_vm0 = vcmp.eq.f32.partialorder %v260_v1, 2139095040  ;;  %vm62_vm1 = vcmp.ne.f32.partialorder %v257_v0, %v61_v7  ;;  %vm305_vm12 = vmand %vm60_vm6, %vm73_vm7  ;;  %s40_s1 = sshll.u32 %s223_s0, 4  ;;  %s41_s1 = int_to_ptr.vmem [resolvable:$true] %s40_s1 }
  0x17   :  { %164 = vlog2.f32 %v272_v6  ;;  %vm280_vm2 = vmor %vm62_vm1, %vm438_vm0  ;;  %vm76_vm8 = vcmp.gt.f32.partialorder %v267_v4, 1065353216  ;;  %vm128_vm13 = vcmp.gt.f32.partialorder %v272_v6, 1065353216  ;;  %v92_v19 = vsel %vm60_vm6, 0, %v221_v18  ;;  %s192_s25 = scalar_lea.vmem %s41_s1, 256  ;;  %p197_p9 = scmp.lt.s32.totalorder %s41_s1, %s41_s1 }
  0x18   :  { %v66_v8 = vcvt.f32.s32 %v65_v5  ;;  %vm69_vm5 = vmneg %vm280_vm2  ;;  %vm64_vm15 = vcmp.lt.f32.partialorder %v260_v1, 1266679808  ;;  %v93_v22 = vxor.u32 2147483648, %v92_v19  ;;  %v80_v25 = vsel %vm60_vm6, 2139095040, %v222_v24  ;;  %p193_p8 = scmp.ne.s32.totalorder %s41_s1, %s192_s25  ;;  %p198_p10 = scmp.lt.s32.totalorder %s192_s25, %s192_s25 }
  0x19   :  { %vm296_vm9 = vmand %vm72_vm3, %vm280_vm2 }
  0x1a   :  { %v67_v9 = vand.u32 1, %v66_v8  ;;  %vm312_vm14 = vmxor %vm60_vm6, %vm76_vm8  ;;  %vm124_vm8 = vcmp.lt.f32.partialorder %v264_v3, 0  ;;  %p199_p11 = por %p198_p10, %p197_p9 }
  0x1b   :  { %vm323_vm1 = vmand %vm60_vm6, %vm439_vm11  ;;  %vm75_vm11 = vcmp.lt.s32.totalorder %v262_v2, 0 }
  0x1c   :  { %vm68_vm4 = vcmp.eq.s32.totalorder %v67_v9, 1  ;;  %p200_p12 = pnand %p199_p11, %p193_p8 }
  0x1d   :  { %vm70_vm10 = vmand %vm68_vm4, %vm69_vm5 }
  0x1e   :  { %vm329_vm4 = vmxor %vm60_vm6, %vm128_vm13  ;;  %vm98_vm6 = vcmp.ne.f32.partialorder %v257_v0, %v257_v0 }
  0x1f   :  { %vm87_vm5 = vmor %vm305_vm12, %vm312_vm14  ;;  %vm58_vm12 = vcmp.eq.f32.partialorder %v257_v0, 0 }
  0x20   :  { %v163_v11 = vpop.eup %162  ;;  %vm338_vm0 = vmand %vm64_vm15, %vm70_vm10  ;;  %v88_v27 = vsel %vm87_vm5, 2139095040, %v222_v24  ;;  %vm89_vm10 = vcmp.eq.f32.partialorder %v262_v2, 3212836864  ;;  %vm127_vm15 = vcmp.lt.s32.totalorder %v264_v3, 0 }
  0x21   :  { %v54_v12 = vmul.f32 %v163_v11, %v257_v0  ;;  %v165_v13 = vpop.eup %164  ;;  %vm139_vm13 = vmor %vm323_vm1, %vm329_vm4  ;;  %v94_v30 = vsel %vm338_vm0, %v93_v22, %v92_v19  ;;  %vm141_vm1 = vcmp.eq.f32.partialorder %v264_v3, 3212836864  ;;  %vm74_vm4 = vcmp.eq.f32.partialorder %v262_v2, 1065353216 }
  0x22   :  { %v106_v14 = vmul.f32 %v165_v13, %v257_v0  ;;  %vm355_vm14 = vmand %vm124_vm8, %vm280_vm2  ;;  %v140_v33 = vsel %vm139_vm13, 2139095040, %v222_v24  ;;  %v90_v35 = vsel %vm89_vm10, 1065353216, %v88_v27  ;;  %v95_v37 = vsel %vm72_vm3, %v94_v30, %v92_v19 }
  0x23   :  { %166 = vpow2.f32 %v54_v12  ;;  %vm82_vm2 = vmand %vm75_vm11, %vm338_vm0  ;;  %vm456_vm11 = vcmp.eq.f32.partialorder %v264_v3, 0  ;;  %vm149_vm13 = vcmp.ne.f32.partialorder %v264_v3, %v264_v3  ;;  %v142_v42 = vsel %vm141_vm1, 1065353216, %v140_v33 }
  0x24   :  { %168 = vpow2.f32 %v106_v14  ;;  %vm134_vm5 = vmand %vm127_vm15, %vm338_vm0  ;;  %vm459_vm3 = vcmp.eq.f32.partialorder %v260_v1, 2139095040  ;;  %vm129_vm15 = vcmp.eq.f32.partialorder %v272_v6, 2139095040  ;;  %v147_v44 = vsel %vm124_vm8, %v94_v30, %v92_v19 }
  0x25   :  { %vm101_vm0 = vmor %vm74_vm4, %vm58_vm12 }
  0x26   :  { %vm460_vm1 = vmmov %vm459_vm3 }
  0x2d   :  { %v167_v26 = vpop.eup %166 }
  0x2e   :  { %v79_v29 = vsel %vm296_vm9, 2143289344, %v167_v26  ;;  %v169_v31 = vpop.eup %168  ;;  %vm97_vm9 = vcmp.ne.f32.partialorder %v262_v2, %v262_v2 }
  0x2f   :  { %v81_v32 = vsel %vm73_vm7, %v80_v25, %v79_v29  ;;  %v131_v36 = vsel %vm355_vm14, 2143289344, %v169_v31  ;;  %vm77_vm7 = vcmp.eq.f32.partialorder %v267_v4, 2139095040  ;;  %vm390_vm10 = vmor %vm97_vm9, %vm98_vm6  ;;  %vm126_vm14 = vcmp.eq.f32.partialorder %v264_v3, 1065353216 }
  0x30   :  { %v83_v34 = vxor.u32 2147483648, %v81_v32  ;;  %v133_v38 = vsel %vm456_vm11, %v80_v25, %v131_v36  ;;  %vm151_vm9 = vmor %vm149_vm13, %vm98_vm6 }
  0x31   :  { %v135_v41 = vxor.u32 2147483648, %v133_v38  ;;  %vm153_vm4 = vmor %vm126_vm14, %vm58_vm12 }
  0x32   :  { %v84_v39 = vsel %vm82_vm2, %v83_v34, %v81_v32  ;;  %vm59_vm2 = vcmp.eq.f32.partialorder %v257_v0, 1065353216 }
  0x33   :  { %v91_v43 = vsel %vm459_vm3, %v90_v35, %v84_v39  ;;  %v136_v46 = vsel %vm134_vm5, %v135_v41, %v133_v38 }
  0x34   :  { %v96_v45 = vsel %vm77_vm7, %v95_v37, %v91_v43  ;;  %v143_v48 = vsel %vm460_vm1, %v142_v42, %v136_v46 }
  0x35   :  { %v100_v47 = vsel %vm390_vm10, 2143289344, %v96_v45  ;;  %v148_v50 = vsel %vm129_vm15, %v147_v44, %v143_v48 }
  0x36   :  { %v102_v49 = vsel %vm101_vm0, 1065353216, %v100_v47  ;;  %v152_v52 = vsel %vm151_vm9, 2143289344, %v148_v50 }
  0x37   :  { %v103_v51 = vsel %vm59_vm2, %v262_v2, %v102_v49  ;;  %v154_v53 = vsel %vm153_vm4, 1065353216, %v152_v52 }
  0x38   :  { %33 = vst [vmem:[#allocation6] sm:$0xff] %v103_v51  ;;  %v155_v54 = vsel %vm59_vm2, %v264_v3, %v154_v53 }
  0x39   :  { %34 = vst [vmem:[#allocation6 + $0x8] sm:$0xff] %v155_v54 }
  0x3a   :  { %203 = shalt.err (!%p200_p12)
}
  0x3b   :  { %s204_s28 = scalar_lea.hbm %s437_s2, 256 }
  0x3c   :  { %p205_p13 = scmp.ne.s32.totalorder %s437_s2, %s204_s28  ;;  %p208_p0 = scmp.lt.u32.totalorder %s204_s28, %s437_s2 }
  0x3e   :  { %p210_p1 = pnand %p208_p0, %p205_p13 }
  0x40   :  { %213 = shalt.err (!%p210_p1)
}
  0x41   :  { %46 = dma.vmem_to_hbm [thread:$0]  %s41_s1, 256, %s437_s2, [#allocation5], %s219_s19, %s219_s19, %s220_s20  }
  0x42   :  { %216 = dma.done.wait [#allocation5], 256  }
  0x43   :  { %217 = vsyncadd [#allocation5], 4294967040 }
  0x44   :  { %50 = vsyncpa [#allocation4], 1 }
  0x45   :  { %51 = vsyncpa [#allocation5], 1 }

</bundles_post_ra>
